<compile_context>
chip_gen: v7x
topology: tpu7x:2x2x1
jax: 0.10.0
libtpu: 0.0.40
codegen_flags: <defaults>
</compile_context>

<pallas_src>
import functools

import jax
import jax.numpy as jnp
from jax.experimental import pallas as pl
from jax.experimental.pallas import tpu as pltpu

_LANE = 128


def _round_up(x, m):
    return (x + m - 1) // m * m


def _cdiv(a, b):
    return (a + b - 1) // b


@functools.lru_cache(maxsize=None)
def _vmem_capacity_bytes():
    """Physical VMEM per TensorCore (64 MiB on v7x, 128 MiB on v5e/v6e)."""
    try:
        info = pltpu.get_tpu_info()
        for name in ("vmem_capacity_bytes", "vmem_size_bytes", "vmem_bytes"):
            v = getattr(info, name, None)
            if v:
                return int(v)
    except Exception:
        pass
    return 64 * 1024 * 1024  # conservative default (v7x)


@functools.lru_cache(maxsize=None)
def _single_buffer_ok():
    """Probe whether pipeline_mode=pl.Buffered(1) compiles & runs here."""
    if not hasattr(pl, "Buffered"):
        return False

    def _probe(x_ref, o_ref):
        o_ref[...] = x_ref[...] + 1.0

    try:
        fn = pl.pallas_call(
            _probe,
            out_shape=jax.ShapeDtypeStruct((8, _LANE), jnp.float32),
            grid=(2,),
            in_specs=[pl.BlockSpec((8, _LANE), lambda i: (0, 0),
                                   pipeline_mode=pl.Buffered(1))],
            out_specs=pl.BlockSpec((8, _LANE), lambda i: (0, 0)),
        )
        jax.block_until_ready(fn(jnp.zeros((8, _LANE), jnp.float32)))
        return True
    except Exception:
        return False


def _vmem_limit(needed_bytes, cap_bytes):
    # Leave headroom below physical capacity for compiler internal scratch.
    hi = max(cap_bytes - 16 * 1024 * 1024, 32 * 1024 * 1024)
    return int(min(max(needed_bytes + (4 << 20), 32 << 20), hi))


def _pick_tile_s(c_in, c_out, s, cap_bytes):
    """Largest lane-aligned spatial tile whose pipelined buffers fit VMEM."""
    s_ceil = _round_up(max(s, 1), _LANE)
    w_bytes = 4 * c_in * c_out
    budget = max(int(0.4 * cap_bytes) - 2 * w_bytes,
                 4 * 2 * (c_in + c_out) * _LANE)
    per_col = 4 * 2 * (c_in + c_out)            # f32, double-buffered x + out
    t = budget // per_col
    hard_cap = 2048 if cap_bytes <= 96 * 1024 * 1024 else 4096  # v7x vs v5e/v6e
    t = max(_LANE, min(t, hard_cap, s_ceil))
    return int((t // _LANE) * _LANE)


def _stats_kernel(x_ref, sum_ref, sq_ref, *, s_valid, tile_s,
                  s_blocks_per_shard, split_spatial, need_mask):
    """Per-channel sum / sum-of-squares, reduced over batch and spatial axes."""
    p = pl.program_id(0)
    n = pl.program_id(1)
    si = pl.program_id(2)

    @pl.when((n == 0) & (si == 0))
    def _():
        sum_ref[...] = jnp.zeros_like(sum_ref)
        sq_ref[...] = jnp.zeros_like(sq_ref)

    x = x_ref[0]                                       # (C_in, TILE_S)
    if need_mask:
        s_block = p * s_blocks_per_shard + si if split_spatial else si
        col = (jax.lax.broadcasted_iota(jnp.int32, x.shape, 1)
               + s_block * tile_s)
        x = jnp.where(col < s_valid, x, 0.0)           # drop out-of-range cols
    sum_ref[0] += jnp.sum(x, axis=1, keepdims=True)
    sq_ref[0] += jnp.sum(x * x, axis=1, keepdims=True)


def _bn_relu_pwconv_kernel(x_ref, ss_ref, w_ref, o_ref):
    """Fused relu(x*scale + shift) followed by W @ h on one spatial tile."""
    # x_ref:  (1, C_in, TILE_S)   native-layout activation tile
    # ss_ref: (2, C_in, 1)        row 0 = BN scale, row 1 = BN shift
    # w_ref:  (C_out, C_in)       pointwise conv weight (natural MXU layout)
    # o_ref:  (1, C_out, TILE_S)
    x = x_ref[0]                                       # (C_in, TILE_S)
    h = jnp.maximum(x * ss_ref[0] + ss_ref[1], 0.0)
    o_ref[0] = jnp.dot(w_ref[...], h,
                       preferred_element_type=jnp.float32).astype(o_ref.dtype)


@functools.partial(jax.jit,
                   static_argnames=("eps", "tile_s", "use_sb", "vmem_cap"))
def _bn_ac_conv3d_impl(x, gamma, beta, weight, *, eps, tile_s, use_sb, vmem_cap):
    n, c_in, d, h, w = x.shape
    c_out = weight.shape[0]
    s = d * h * w

    # Native layout view: (N, C_in, S).  Free reshape, no transpose, no pad.
    x3 = x.reshape(n, c_in, s).astype(jnp.float32)

    s_blocks = _cdiv(s, tile_s)
    need_mask = s_blocks * tile_s > s

    # ---- pass 1: BN batch statistics (single HBM read of x) ----------------
    # Leading "parallel" grid axis shards the reduction across v7x's two
    # TensorCores; each shard owns its own partial accumulators.
    if s_blocks % 2 == 0:
        p_shards, n_per, s_per, split_spatial = 2, n, s_blocks // 2, True
    elif n % 2 == 0:
        p_shards, n_per, s_per, split_spatial = 2, n // 2, s_blocks, False
    else:
        p_shards, n_per, s_per, split_spatial = 1, n, s_blocks, False

    if split_spatial:
        x_stats_map = lambda p, ni, si: (ni, 0, p * s_per + si)
    elif p_shards == 2:
        x_stats_map = lambda p, ni, si: (p * n_per + ni, 0, si)
    else:
        x_stats_map = lambda p, ni, si: (ni, 0, si)

    stats_vmem = _vmem_limit(2 * 4 * c_in * tile_s, vmem_cap)
    sums, sumsq = pl.pallas_call(
        functools.partial(_stats_kernel, s_valid=s, tile_s=tile_s,
                          s_blocks_per_shard=s_per,
                          split_spatial=split_spatial, need_mask=need_mask),
        out_shape=(jax.ShapeDtypeStruct((p_shards, c_in, 1), jnp.float32),
                   jax.ShapeDtypeStruct((p_shards, c_in, 1), jnp.float32)),
        grid=(p_shards, n_per, s_per),
        in_specs=[pl.BlockSpec((1, c_in, tile_s), x_stats_map)],
        out_specs=(pl.BlockSpec((1, c_in, 1), lambda p, ni, si: (p, 0, 0)),
                   pl.BlockSpec((1, c_in, 1), lambda p, ni, si: (p, 0, 0))),
        compiler_params=pltpu.CompilerParams(
            dimension_semantics=("parallel", "arbitrary", "arbitrary"),
            vmem_limit_bytes=stats_vmem),
    )(x3)

    inv_m = 1.0 / float(n * s)                        # TRUE element count
    mean = jnp.sum(sums, axis=0) * inv_m              # (C_in, 1)
    var = jnp.maximum(jnp.sum(sumsq, axis=0) * inv_m - mean * mean, 0.0)
    scale = gamma.astype(jnp.float32).reshape(c_in, 1) * jax.lax.rsqrt(var + eps)
    shift = beta.astype(jnp.float32).reshape(c_in, 1) - mean * scale
    ss = jnp.stack([scale, shift], axis=0)            # (2, C_in, 1)

    w2d = weight.reshape(c_out, c_in).astype(jnp.float32)

    # ---- pass 2: fused BN-affine + ReLU + pointwise conv -------------------
    sb_kw = {"pipeline_mode": pl.Buffered(1)} if use_sb else {}
    n_wbuf = 1 if use_sb else 2
    main_vmem = _vmem_limit(
        2 * 4 * c_in * tile_s + 2 * 4 * c_out * tile_s
        + n_wbuf * 4 * c_in * c_out, vmem_cap)
    out3 = pl.pallas_call(
        _bn_relu_pwconv_kernel,
        out_shape=jax.ShapeDtypeStruct((n, c_out, s), jnp.float32),
        grid=(n, s_blocks),
        in_specs=[
            pl.BlockSpec((1, c_in, tile_s), lambda ni, si: (ni, 0, si)),
            pl.BlockSpec((2, c_in, 1), lambda ni, si: (0, 0, 0), **sb_kw),
            pl.BlockSpec((c_out, c_in), lambda ni, si: (0, 0), **sb_kw),
        ],
        out_specs=pl.BlockSpec((1, c_out, tile_s), lambda ni, si: (ni, 0, si)),
        compiler_params=pltpu.CompilerParams(
            dimension_semantics=("parallel", "parallel"),
            vmem_limit_bytes=main_vmem),
    )(x3, ss, w2d)

    return out3.reshape(n, c_out, d, h, w)


def bn_ac_conv3d(x, gamma, beta, weight, *, eps=1e-5, tile_s=None):
    """relu(batchnorm3d(x)) followed by pointwise Conv3d (bias=False).

    x: (N, C_in, D, H, W) float32; weight: (C_out, C_in, 1, 1, 1).
    """
    if weight.ndim != 5 or tuple(weight.shape[2:]) != (1, 1, 1):
        # TODO(synk): general kernel/stride/pad and the r21 (R2P1D) branch.
        raise NotImplementedError("only pointwise (1,1,1) conv is supported")
    n, c_in, d, h, w = x.shape
    c_out = weight.shape[0]
    cap = _vmem_capacity_bytes()
    if tile_s is None:
        tile_s = _pick_tile_s(c_in, c_out, d * h * w, cap)
    return _bn_ac_conv3d_impl(
        x, gamma, beta, weight, eps=float(eps), tile_s=int(tile_s),
        use_sb=bool(_single_buffer_ok()), vmem_cap=int(cap))


def _reference(x, gamma, beta, weight, eps=1e-5):
    mean = jnp.mean(x, axis=(0, 2, 3, 4), keepdims=True)
    var = jnp.mean(jnp.square(x - mean), axis=(0, 2, 3, 4), keepdims=True)
    h = (x - mean) / jnp.sqrt(var + eps)
    h = h * gamma[None, :, None, None, None] + beta[None, :, None, None, None]
    h = jnp.maximum(h, 0.0)
    # pointwise conv == einsum over channel axis
    return jnp.einsum("ncdhw,kc->nkdhw", h, weight.reshape(weight.shape[0], -1))


if __name__ == "__main__":
    key = jax.random.PRNGKey(0)
    k_x, k_g, k_b, k_w = jax.random.split(key, 4)

    # small shapes: batch=2, num_in=4, num_filter=8, D=8, H=W=16
    N, C_IN, C_OUT, D, H, W = 2, 4, 8, 8, 16, 16

    x = jax.random.normal(k_x, (N, C_IN, D, H, W), dtype=jnp.float32)
    gamma = 1.0 + 0.1 * jax.random.normal(k_g, (C_IN,), dtype=jnp.float32)
    beta = 0.1 * jax.random.normal(k_b, (C_IN,), dtype=jnp.float32)
    # Conv3d weight (C_out, C_in, 1, 1, 1), kaiming-ish deterministic init
    weight = jax.random.normal(k_w, (C_OUT, C_IN, 1, 1, 1),
                               dtype=jnp.float32) * (2.0 / C_IN) ** 0.5

    out = bn_ac_conv3d(x, gamma, beta, weight)
    out = jax.block_until_ready(out)

    ref = _reference(x, gamma, beta, weight)
    assert out.shape == (N, C_OUT, D, H, W)
    assert jnp.allclose(out, ref, rtol=1e-3, atol=1e-3), float(
        jnp.max(jnp.abs(out - ref)))

    print("KERNEL_OK")
</pallas_src>

<mosaic_0001>
module attributes {stable_mosaic.version = 11 : i64} {
  func.func @_probe(%arg0: i32, %arg1: memref<8x128xf32, #tpu.memory_space<vmem>>, %arg2: memref<8x128xf32, #tpu.memory_space<vmem>>) attributes {dimension_semantics = [#tpu.dimension_semantics<arbitrary>], iteration_bounds = array<i64: 2>, scalar_prefetch = 0 : i64, scratch_operands = 0 : i64, tpu.core_type = #tpu.core_type<tc>, window_params = [{pipeline_mode = #tpu.pipeline_mode<synchronous>, transform_indices = @transform_0, window_bounds = array<i64: 8, 128>}, {pipeline_mode = #tpu.pipeline_mode<synchronous>, transform_indices = @transform_1, window_bounds = array<i64: 8, 128>}]} {
    %c0 = arith.constant 0 : index
    %c0_0 = arith.constant 0 : index
    %0 = vector.load %arg1[%c0, %c0_0] : memref<8x128xf32, #tpu.memory_space<vmem>>, vector<8x128xf32>
    %cst = arith.constant 1.000000e+00 : f32
    %1 = vector.broadcast %cst : f32 to vector<8x128xf32>
    %2 = arith.addf %0, %1 : vector<8x128xf32>
    %c0_1 = arith.constant 0 : index
    %c0_2 = arith.constant 0 : index
    %3 = vector.load %arg2[%c0_1, %c0_2] : memref<8x128xf32, #tpu.memory_space<vmem>>, vector<8x128xf32>
    tpu.vector_store %arg2[%c0_1, %c0_2], %2 {strides = array<i32>} : memref<8x128xf32, #tpu.memory_space<vmem>>, vector<8x128xf32>,
    return
  }
  func.func @transform_0(%arg0: i32) -> (i32, i32) {
    %c0_i32 = arith.constant 0 : i32
    %c0_i32_0 = arith.constant 0 : i32
    %c0_i32_1 = arith.constant 0 : i32
    return %c0_i32, %c0_i32_0 : i32, i32
  }
  func.func @transform_1(%arg0: i32) -> (i32, i32) {
    %c0_i32 = arith.constant 0 : i32
    %c0_i32_0 = arith.constant 0 : i32
    %c0_i32_1 = arith.constant 0 : i32
    return %c0_i32, %c0_i32_0 : i32, i32
  }
}

module attributes {stable_mosaic.version = 11 : i64} {
  func.func @_stats_kernel(%arg0: i32, %arg1: i32, %arg2: i32, %arg3: memref<1x4x2048xf32, #tpu.memory_space<vmem>>, %arg4: memref<1x4x1xf32, #tpu.memory_space<vmem>>, %arg5: memref<1x4x1xf32, #tpu.memory_space<vmem>>) attributes {dimension_semantics = [#tpu.dimension_semantics<parallel>, #tpu.dimension_semantics<arbitrary>, #tpu.dimension_semantics<arbitrary>], iteration_bounds = array<i64: 2, 1, 1>, scalar_prefetch = 0 : i64, scratch_operands = 0 : i64, tpu.core_type = #tpu.core_type<tc>, window_params = [{transform_indices = @transform_0, window_bounds = array<i64: 1, 4, 2048>}, {transform_indices = @transform_1, window_bounds = array<i64: 1, 4, 1>}, {transform_indices = @transform_2, window_bounds = array<i64: 1, 4, 1>}]} {
    %c0_i32 = arith.constant 0 : i32
    %0 = arith.cmpi eq, %arg1, %c0_i32 : i32
    %c0_i32_0 = arith.constant 0 : i32
    %1 = arith.cmpi eq, %arg2, %c0_i32_0 : i32
    %2 = arith.andi %0, %1 : i1
    %3 = arith.extui %2 : i1 to i32
    %c0_i32_1 = arith.constant 0 : i32
    %4 = arith.cmpi ne, %3, %c0_i32_1 : i32
    scf.if %4 {
      %cst_17 = arith.constant 0.000000e+00 : f32
      %24 = vector.broadcast %cst_17 : f32 to vector<1x4x1xf32>
      %c0_18 = arith.constant 0 : index
      %c0_19 = arith.constant 0 : index
      %c0_20 = arith.constant 0 : index
      %25 = vector.load %arg4[%c0_18, %c0_19, %c0_20] : memref<1x4x1xf32, #tpu.memory_space<vmem>>, vector<1x4x1xf32>
      tpu.vector_store %arg4[%c0_18, %c0_19, %c0_20], %24 {strides = array<i32>} : memref<1x4x1xf32, #tpu.memory_space<vmem>>, vector<1x4x1xf32>,
      %cst_21 = arith.constant 0.000000e+00 : f32
      %26 = vector.broadcast %cst_21 : f32 to vector<1x4x1xf32>
      %c0_22 = arith.constant 0 : index
      %c0_23 = arith.constant 0 : index
      %c0_24 = arith.constant 0 : index
      %27 = vector.load %arg5[%c0_22, %c0_23, %c0_24] : memref<1x4x1xf32, #tpu.memory_space<vmem>>, vector<1x4x1xf32>
      tpu.vector_store %arg5[%c0_22, %c0_23, %c0_24], %26 {strides = array<i32>} : memref<1x4x1xf32, #tpu.memory_space<vmem>>, vector<1x4x1xf32>,
    } else {
    }
    %c0 = arith.constant 0 : index
    %c0_2 = arith.constant 0 : index
    %c0_3 = arith.constant 0 : index
    %5 = vector.load %arg3[%c0, %c0_2, %c0_3] : memref<1x4x2048xf32, #tpu.memory_space<vmem>>, vector<1x4x2048xf32>
    %6 = vector.shape_cast %5 : vector<1x4x2048xf32> to vector<4x2048xf32>
    %c0_4 = arith.constant 0 : index
    %c0_5 = arith.constant 0 : index
    %c0_6 = arith.constant 0 : index
    %7 = vector.load %arg4[%c0_4, %c0_5, %c0_6] : memref<1x4x1xf32, #tpu.memory_space<vmem>>, vector<1x4x1xf32>
    %8 = vector.shape_cast %7 : vector<1x4x1xf32> to vector<4x1xf32>
    %cst = arith.constant dense<0.000000e+00> : vector<4xf32>
    %9 = vector.multi_reduction <add>, %6, %cst [1] : vector<4x2048xf32> to vector<4xf32>
    %10 = vector.shape_cast %9 : vector<4xf32> to vector<4x1xf32>
    %11 = arith.addf %8, %10 : vector<4x1xf32>
    %c0_7 = arith.constant 0 : index
    %c0_8 = arith.constant 0 : index
    %c0_9 = arith.constant 0 : index
    %12 = vector.load %arg4[%c0_7, %c0_8, %c0_9] : memref<1x4x1xf32, #tpu.memory_space<vmem>>, vector<1x4x1xf32>
    %13 = vector.shape_cast %12 : vector<1x4x1xf32> to vector<4x1xf32>
    %14 = vector.shape_cast %11 : vector<4x1xf32> to vector<1x4x1xf32>
    tpu.vector_store %arg4[%c0_7, %c0_8, %c0_9], %14 {strides = array<i32>} : memref<1x4x1xf32, #tpu.memory_space<vmem>>, vector<1x4x1xf32>,
    %c0_10 = arith.constant 0 : index
    %c0_11 = arith.constant 0 : index
    %c0_12 = arith.constant 0 : index
    %15 = vector.load %arg5[%c0_10, %c0_11, %c0_12] : memref<1x4x1xf32, #tpu.memory_space<vmem>>, vector<1x4x1xf32>
    %16 = vector.shape_cast %15 : vector<1x4x1xf32> to vector<4x1xf32>
    %17 = arith.mulf %6, %6 : vector<4x2048xf32>
    %cst_13 = arith.constant dense<0.000000e+00> : vector<4xf32>
    %18 = vector.multi_reduction <add>, %17, %cst_13 [1] : vector<4x2048xf32> to vector<4xf32>
    %19 = vector.shape_cast %18 : vector<4xf32> to vector<4x1xf32>
    %20 = arith.addf %16, %19 : vector<4x1xf32>
    %c0_14 = arith.constant 0 : index
    %c0_15 = arith.constant 0 : index
    %c0_16 = arith.constant 0 : index
    %21 = vector.load %arg5[%c0_14, %c0_15, %c0_16] : memref<1x4x1xf32, #tpu.memory_space<vmem>>, vector<1x4x1xf32>
    %22 = vector.shape_cast %21 : vector<1x4x1xf32> to vector<4x1xf32>
    %23 = vector.shape_cast %20 : vector<4x1xf32> to vector<1x4x1xf32>
    tpu.vector_store %arg5[%c0_14, %c0_15, %c0_16], %23 {strides = array<i32>} : memref<1x4x1xf32, #tpu.memory_space<vmem>>, vector<1x4x1xf32>,
    return
  }
  func.func @transform_0(%arg0: i32, %arg1: i32, %arg2: i32) -> (i32, i32, i32) {
    %c1_i32 = arith.constant 1 : i32
    %0 = arith.muli %arg0, %c1_i32 : i32
    %1 = arith.addi %0, %arg1 : i32
    %c0_i32 = arith.constant 0 : i32
    %c0_i32_0 = arith.constant 0 : i32
    return %1, %c0_i32, %arg2 : i32, i32, i32
  }
  func.func @transform_1(%arg0: i32, %arg1: i32, %arg2: i32) -> (i32, i32, i32) {
    %c0_i32 = arith.constant 0 : i32
    %c0_i32_0 = arith.constant 0 : i32
    %c0_i32_1 = arith.constant 0 : i32
    return %arg0, %c0_i32, %c0_i32_0 : i32, i32, i32
  }
  func.func @transform_2(%arg0: i32, %arg1: i32, %arg2: i32) -> (i32, i32, i32) {
    %c0_i32 = arith.constant 0 : i32
    %c0_i32_0 = arith.constant 0 : i32
    %c0_i32_1 = arith.constant 0 : i32
    return %arg0, %c0_i32, %c0_i32_0 : i32, i32, i32
  }
}

module attributes {stable_mosaic.version = 11 : i64} {
  func.func @_bn_relu_pwconv_kernel(%arg0: i32, %arg1: i32, %arg2: memref<1x4x2048xf32, #tpu.memory_space<vmem>>, %arg3: memref<2x4x1xf32, #tpu.memory_space<vmem>>, %arg4: memref<8x4xf32, #tpu.memory_space<vmem>>, %arg5: memref<1x8x2048xf32, #tpu.memory_space<vmem>>) attributes {dimension_semantics = [#tpu.dimension_semantics<parallel>, #tpu.dimension_semantics<parallel>], iteration_bounds = array<i64: 2, 1>, scalar_prefetch = 0 : i64, scratch_operands = 0 : i64, tpu.core_type = #tpu.core_type<tc>, window_params = [{transform_indices = @transform_0, window_bounds = array<i64: 1, 4, 2048>}, {pipeline_mode = #tpu.pipeline_mode<synchronous>, transform_indices = @transform_1, window_bounds = array<i64: 2, 4, 1>}, {pipeline_mode = #tpu.pipeline_mode<synchronous>, transform_indices = @transform_2, window_bounds = array<i64: 8, 4>}, {transform_indices = @transform_3, window_bounds = array<i64: 1, 8, 2048>}]} {
    %c0 = arith.constant 0 : index
    %c0_0 = arith.constant 0 : index
    %c0_1 = arith.constant 0 : index
    %0 = vector.load %arg2[%c0, %c0_0, %c0_1] : memref<1x4x2048xf32, #tpu.memory_space<vmem>>, vector<1x4x2048xf32>
    %1 = vector.shape_cast %0 : vector<1x4x2048xf32> to vector<4x2048xf32>
    %c0_2 = arith.constant 0 : index
    %c0_3 = arith.constant 0 : index
    %c0_4 = arith.constant 0 : index
    %2 = vector.load %arg3[%c0_2, %c0_3, %c0_4] : memref<2x4x1xf32, #tpu.memory_space<vmem>>, vector<1x4x1xf32>
    %3 = vector.shape_cast %2 : vector<1x4x1xf32> to vector<4x1xf32>
    %4 = vector.broadcast %3 : vector<4x1xf32> to vector<4x2048xf32>
    %5 = arith.mulf %1, %4 : vector<4x2048xf32>
    %c1 = arith.constant 1 : index
    %c0_5 = arith.constant 0 : index
    %c0_6 = arith.constant 0 : index
    %6 = vector.load %arg3[%c1, %c0_5, %c0_6] : memref<2x4x1xf32, #tpu.memory_space<vmem>>, vector<1x4x1xf32>
    %7 = vector.shape_cast %6 : vector<1x4x1xf32> to vector<4x1xf32>
    %8 = vector.broadcast %7 : vector<4x1xf32> to vector<4x2048xf32>
    %9 = arith.addf %5, %8 : vector<4x2048xf32>
    %cst = arith.constant 0.000000e+00 : f32
    %10 = vector.broadcast %cst : f32 to vector<4x2048xf32>
    %11 = arith.maximumf %9, %10 : vector<4x2048xf32>
    %c0_7 = arith.constant 0 : index
    %c0_8 = arith.constant 0 : index
    %12 = vector.load %arg4[%c0_7, %c0_8] : memref<8x4xf32, #tpu.memory_space<vmem>>, vector<8x4xf32>
    %cst_9 = arith.constant dense<0.000000e+00> : vector<8x2048xf32>
    %13 = tpu.matmul %12, %11, %cst_9 {dimension_numbers = #tpu.dot_dimension_numbers<[1], [0], [0], [1], [0, 0, 1, 1], [], []>} : vector<8x4xf32>, vector<4x2048xf32>, vector<8x2048xf32> -> vector<8x2048xf32>
    %c0_10 = arith.constant 0 : index
    %c0_11 = arith.constant 0 : index
    %c0_12 = arith.constant 0 : index
    %14 = vector.load %arg5[%c0_10, %c0_11, %c0_12] : memref<1x8x2048xf32, #tpu.memory_space<vmem>>, vector<1x8x2048xf32>
    %15 = vector.shape_cast %14 : vector<1x8x2048xf32> to vector<8x2048xf32>
    %16 = vector.shape_cast %13 : vector<8x2048xf32> to vector<1x8x2048xf32>
    tpu.vector_store %arg5[%c0_10, %c0_11, %c0_12], %16 {strides = array<i32>} : memref<1x8x2048xf32, #tpu.memory_space<vmem>>, vector<1x8x2048xf32>,
    return
  }
  func.func @transform_0(%arg0: i32, %arg1: i32) -> (i32, i32, i32) {
    %c0_i32 = arith.constant 0 : i32
    %c0_i32_0 = arith.constant 0 : i32
    return %arg0, %c0_i32, %arg1 : i32, i32, i32
  }
  func.func @transform_1(%arg0: i32, %arg1: i32) -> (i32, i32, i32) {
    %c0_i32 = arith.constant 0 : i32
    %c0_i32_0 = arith.constant 0 : i32
    %c0_i32_1 = arith.constant 0 : i32
    %c0_i32_2 = arith.constant 0 : i32
    return %c0_i32, %c0_i32_0, %c0_i32_1 : i32, i32, i32
  }
  func.func @transform_2(%arg0: i32, %arg1: i32) -> (i32, i32) {
    %c0_i32 = arith.constant 0 : i32
    %c0_i32_0 = arith.constant 0 : i32
    %c0_i32_1 = arith.constant 0 : i32
    return %c0_i32, %c0_i32_0 : i32, i32
  }
  func.func @transform_3(%arg0: i32, %arg1: i32) -> (i32, i32, i32) {
    %c0_i32 = arith.constant 0 : i32
    %c0_i32_0 = arith.constant 0 : i32
    return %arg0, %c0_i32, %arg1 : i32, i32, i32
  }
}

</mosaic_0001>

<bundles_post_ra>
// kernel: tpu_custom_call.1
= control target key start
LH: loop header
LB: loop body
LE: loop exit
PB: predicated region body
PF: predicated region fallthrough
CT: control target
= control target key end

     0   :  { %6 = vsyncpa [#allocation3], 0  ;;  %s341_s0 = inlined_call_operand.hbm [shape: f32[8,128], index: 0, kind: input, shape index: {}]   ;;  %s342_s1 = inlined_call_operand.hbm [shape: f32[8,128], index: 1, kind: output, shape index: {}]  }
   0x1   :  { %7 = vsyncpa [#allocation4], 0  ;;  %s262_s6 = smov 0  }
   0x2 LB: > { %s145_s7 = sadd.s32 4294967295, %s248_s6   ;;  %p146_p0 = scmp.ge.s32.totalorder %s248_s6, 1  ;;  %s248_s6 = sphi %s262_s6, %s13_s6  }
   0x3   : > { %p60_p1 = scmp.lt.s32.totalorder %s248_s6, 3  ;;  %p276_p3 = scmp.eq.s32.totalorder %s145_s7, 0 }
   0x4   : > { %s250_s10 = smov [#allocation2]   ;;  %s180_s15 = scalar_lea.hbm %s341_s0, 128 }
   0x5   : > { %p270_p2 = pnand %p146_p0, %p60_p1  ;;  %s73_s11 = sshll.u32 %s250_s10, 4  ;;  %s74_s11 = int_to_ptr.vmem [resolvable:$true] %s73_s11 }
   0x6   : > { %s347_s9 = scalar_select %p276_p3, 1, 0 }
   0x7   : > { %s346_s8 = scalar_select %p270_p2, 1, 0 }
   0x8   : > { %p162_p4 = pneg %p270_p2  ;;  %p181_p6 = scmp.ne.s32.totalorder %s341_s0, %s180_s15 }
   0x9   : > { %p187_p10 = scmp.lt.u32.totalorder %s180_s15, %s341_s0 }
   0xa   : > { %p284_p5 = pnand %p276_p3, %p162_p4 }
   0xc   : > { %p182_p7 = pneg %p284_p5 }
   0xe   : > { %p183_p8 = pnand %p182_p7, %p181_p6 }
  0x10   : > { %p184_p9 = pneg %p183_p8 }
  0x12   : > { %p189_p11 = pnand %p187_p10, %p184_p9 }
  0x14   : > { %192 = shalt.err (!%p189_p11)
}
  0x15   : > { %s193_s20 = scalar_lea.vmem %s74_s11, 128  ;;  %p201_p1 = scmp.lt.s32.totalorder %s74_s11, %s74_s11 }
  0x16   : > { %p194_p12 = scmp.ne.s32.totalorder %s74_s11, %s193_s20  ;;  %p202_p4 = scmp.lt.s32.totalorder %s193_s20, %s193_s20 }
  0x18   : > { %p196_p13 = pnand %p194_p12, %p182_p7  ;;  %p203_p3 = por %p202_p4, %p201_p1 }
  0x1a   : > { %p197_p0 = pneg %p196_p13 }
  0x1c   : > { %p204_p2 = pnand %p203_p3, %p197_p0 }
  0x1e   : > { %207 = shalt.err (!%p204_p2)
}
  0x1f   : > { %165 = dma.hbm_to_vmem [thread:$0]  (!%p284_p5), %s341_s0, 128, %s74_s11, [#allocation3]  }
  0x20   : > { %p349_p6 = scmp.ne.s32.totalorder %s346_s8, 0 }
  0x21   : > { %p350_p8 = scmp.ne.s32.totalorder (!%p349_p6), %s347_s9, 0 }
  0x22   : > { %86 = sbr.rel (%p349_p6) target bundleno = 67 (0x43), region = 24 }
  0x29   : > { %239 = dma.done.wait (%p350_p8), [#allocation3], 128  }
  0x2a   : > { %241 = vsyncadd (%p350_p8), [#allocation3], 4294967168  ;;  %s251_s23 = smov [#allocation5]   ;;  %v96_v0 = vld [vmem:[#allocation2] sm:$0xff]  ;;  %p312_p2 = scmp.eq.s32.totalorder %s145_s7, 1 }
  0x2b   : > { %s106_s24 = sshll.u32 %s251_s23, 4  ;;  %v97_v1 = vadd.f32 1.0, %v96_v0  ;;  %s107_s24 = int_to_ptr.vmem [resolvable:$true] %s106_s24 }
  0x2c   : > { %s208_s26 = scalar_lea.vmem %s107_s24, 128  ;;  %p215_p9 = scmp.lt.s32.totalorder %s107_s24, %s107_s24 }
  0x2d   : > { %98 = vst [vmem:[#allocation5] sm:$0xff] %v97_v1  ;;  %p209_p3 = scmp.ne.s32.totalorder %s107_s24, %s208_s26  ;;  %p216_p10 = scmp.lt.s32.totalorder %s208_s26, %s208_s26 }
  0x2f   : > { %p210_p5 = pnand %p209_p3, %p312_p2  ;;  %p217_p11 = por %p216_p10, %p215_p9 }
  0x31   : > { %p211_p7 = pneg %p210_p5 }
  0x33   : > { %p218_p12 = pnand %p217_p11, %p211_p7 }
  0x35   : > { %221 = shalt.err (!%p218_p12)
}
  0x36   : > { %s222_s29 = scalar_lea.hbm %s342_s1, 128 }
  0x37   : > { %p223_p13 = scmp.ne.s32.totalorder %s342_s1, %s222_s29  ;;  %p228_p4 = scmp.lt.u32.totalorder %s222_s29, %s342_s1 }
  0x39   : > { %p224_p0 = pnand %p223_p13, %p312_p2 }
  0x3b   : > { %p225_p1 = pneg %p224_p0 }
  0x3d   : > { %p230_p6 = pnand %p228_p4, %p225_p1 }
  0x3f   : > { %233 = shalt.err (!%p230_p6)
}
  0x40   : > { %159 = dma.vmem_to_hbm [thread:$0]  (%p312_p2), %s107_s24, 128, %s342_s1, [#allocation4]  }
  0x41   : > { %243 = dma.done.wait (%p312_p2), [#allocation4], 128  }
  0x42   : > { %245 = vsyncadd (%p312_p2), [#allocation4], 4294967168 }
  0x43 PF: > { %s13_s6 = sadd.s32 1, %s248_s6  }
  0x44   : > { %p10_p8 = scmp.ge.s32.totalorder %s13_s6, 4  }
  0x46   :  { %12 = sbr.rel (!%p10_p8) target bundleno = 2 (0x2), region = 53 }
  0x4d   :  { %119 = vsyncpa [#allocation3], 1 }
  0x4e   :  { %121 = vsyncpa [#allocation3 + $0x1], 1 }
  0x4f   :  { %122 = vsyncpa [#allocation4], 1 }
  0x50   :  { %124 = vsyncpa [#allocation4 + $0x1], 1 }

// kernel: _bn_ac_conv3d_impl.2
= control target key start
LH: loop header
LB: loop body
LE: loop exit
PB: predicated region body
PF: predicated region fallthrough
CT: control target
= control target key end

     0   :  { %s528_s9 = smov 0   ;;  %s530_s10 = smov 0   ;;  %s625_s0 = inlined_call_operand.vmem [shape: f32[2,4,2048], index: 0, kind: input, shape index: {}]   ;;  %s626_s1 = inlined_call_operand.vmem [shape: f32[2,4,1], index: 1, kind: output, shape index: {0}]   ;;  %s627_s2 = inlined_call_operand.vmem [shape: f32[2,4,1], index: 2, kind: output, shape index: {1}]  }
   0x1   :  { %s532_s11 = smov 0  }
   0x2 LB: > { %s32_s12 = sadd.s32 1, %s506_s10  ;;  %p447_p0 = scmp.ge.s32.totalorder %s510_s11, 1  ;;  %s510_s11 = sphi %s532_s11, %s13_s11   ;;  %s506_s10 = sphi %s530_s10, %s629_s10   ;;  %s502_s9 = sphi %s528_s9, %s628_s9  }
   0x3   : > { %p34_p1 = scmp.ge.s32.totalorder %s32_s12, 2  ;;  %p145_p2 = scmp.lt.s32.totalorder %s510_s11, 3 }
   0x5   : > { %s631_s12 = smov (%p34_p1, %s32_s12), 0  ;;  %p146_p3 = pnand %p447_p0, %p145_p2 }
   0x6   : > { %p177_p4 = scmp.lt.s32.totalorder (!%p146_p3), %s502_s9, 1  ;;  %vm201_vm0 = vcmask (!%p146_p3), 3072   ;;  %vm237_vm1 = vcmask (!%p146_p3), 1043456   ;;  %v512_v2 = vmov (!%p146_p3), 0.0  }
   0x7   : > { %149 = sbr.rel (%p146_p3) target bundleno = 200 (0xc8), region = 24 }
   0xe   : > { %s633_s9 = smov (!%p177_p4, %s502_s9), 1 }
   0xf   : > { %s454_s13 = sshll.u32 %s633_s9, 6  ;;  %s450_s14 = sshll.u32 %s633_s9, 2 }
  0x10   : > { %s553_s17 = scalar_lea.vmem %s625_s0, %s454_s13  ;;  %s560_s20 = scalar_lea.vmem %s626_s1, %s450_s14 }
  0x11   : > { %v204_v0 = vld [vmem:[%s553_s17] sm:$0xff]  ;;  %v205_v1 = vld [vmem:[%s553_s17 + $0x8] sm:$0xff]  ;;  %202 = vst.msk [vmem:[%s560_s20] sm:$0xf] %vm201_vm0, %v512_v2  ;;  %v206_v6 = vld [vmem:[%s553_s17 + $0x10] sm:$0xff]  ;;  %s194_s23 = scalar_lea.vmem %s627_s2, %s450_s14 }
  0x12   : > { %v221_v3 = vcombine.high %v204_v0, %v204_v0  ;;  %v222_v4 = vcombine.high %v205_v1, %v205_v1  ;;  %v238_v5 = vsel %vm237_vm1, %v204_v0, 0.0  ;;  %v241_v8 = vsel %vm237_vm1, %v205_v1, 0.0  ;;  %v207_v12 = vld [vmem:[%s553_s17 + $0x18] sm:$0xff]  ;;  %v208_v21 = vld [vmem:[%s553_s17 + $0x20] sm:$0xff]  ;;  %v209_v33 = vld [vmem:[%s553_s17 + $0x28] sm:$0xff] }
  0x13   : > { %v223_v10 = vcombine.high %v206_v6, %v206_v6  ;;  %v245_v14 = vsel %vm237_vm1, %v206_v6, 0.0  ;;  %v275_v15 = vmul.f32 %v204_v0, %v204_v0  ;;  %v276_v16 = vmul.f32 %v205_v1, %v205_v1  ;;  %v210_v45 = vld [vmem:[%s553_s17 + $0x30] sm:$0xff]  ;;  %v211_v57 = vld [vmem:[%s553_s17 + $0x38] sm:$0xff]  ;;  %203 = vst.msk [vmem:[%s194_s23] sm:$0xf] %vm201_vm0, %v512_v2 }
  0x14   : > { %v239_v7 = vsel %vm237_vm1, %v221_v3, 0.0  ;;  %v243_v11 = vsel %vm237_vm1, %v222_v4, 0.0  ;;  %v224_v18 = vcombine.high %v207_v12, %v207_v12  ;;  %v277_v23 = vmul.f32 %v206_v6, %v206_v6 }
  0x15   : > { %v240_v9 = vadd.f32 %v239_v7, %v238_v5  ;;  %v247_v19 = vsel %vm237_vm1, %v223_v10, 0.0  ;;  %v291_v20 = vcombine.high %v275_v15, %v275_v15  ;;  %v292_v24 = vcombine.high %v276_v16, %v276_v16 }
  0x16   : > { %v249_v25 = vsel %vm237_vm1, %v207_v12, 0.0  ;;  %v307_v27 = vsel %vm237_vm1, %v275_v15, 0.0  ;;  %v310_v29 = vsel %vm237_vm1, %v276_v16, 0.0  ;;  %v225_v30 = vcombine.high %v208_v21, %v208_v21 }
  0x17   : > { %v242_v13 = vadd.f32 %v241_v8, %v240_v9  ;;  %v308_v28 = vsel %vm237_vm1, %v291_v20, 0.0  ;;  %v251_v31 = vsel %vm237_vm1, %v224_v18, 0.0  ;;  %v278_v35 = vmul.f32 %v207_v12, %v207_v12 }
  0x18   : > { %v309_v32 = vadd.f32 %v308_v28, %v307_v27  ;;  %v293_v36 = vcombine.high %v277_v23, %v277_v23  ;;  %v312_v37 = vsel %vm237_vm1, %v292_v24, 0.0  ;;  %v253_v38 = vsel %vm237_vm1, %v208_v21, 0.0 }
  0x19   : > { %v244_v17 = vadd.f32 %v243_v11, %v242_v13  ;;  %v314_v41 = vsel %vm237_vm1, %v277_v23, 0.0  ;;  %v226_v42 = vcombine.high %v209_v33, %v209_v33  ;;  %v255_v43 = vsel %vm237_vm1, %v225_v30, 0.0 }
  0x1a   : > { %v311_v39 = vadd.f32 %v310_v29, %v309_v32  ;;  %v279_v47 = vmul.f32 %v208_v21, %v208_v21  ;;  %v294_v48 = vcombine.high %v278_v35, %v278_v35  ;;  %v316_v49 = vsel %vm237_vm1, %v293_v36, 0.0  ;;  %v212_v32 = vld [vmem:[%s560_s20] sm:$0xf] }
  0x1b   : > { %v246_v22 = vadd.f32 %v245_v14, %v244_v17  ;;  %v257_v50 = vsel %vm237_vm1, %v209_v33, 0.0  ;;  %v318_v53 = vsel %vm237_vm1, %v278_v35, 0.0  ;;  %v227_v54 = vcombine.high %v210_v45, %v210_v45  ;;  %v274_v35 = vld [vmem:[%s194_s23] sm:$0xf] }
  0x1c   : > { %v313_v44 = vadd.f32 %v312_v37, %v311_v39  ;;  %v259_v55 = vsel %vm237_vm1, %v226_v42, 0.0  ;;  %v280_v59 = vmul.f32 %v209_v33, %v209_v33  ;;  %v295_v60 = vcombine.high %v279_v47, %v279_v47 }
  0x1d   : > { %v248_v26 = vadd.f32 %v247_v19, %v246_v22  ;;  %v320_v61 = vsel %vm237_vm1, %v294_v48, 0.0  ;;  %v261_v62 = vsel %vm237_vm1, %v210_v45, 0.0  ;;  %v322_v1 = vsel %vm237_vm1, %v279_v47, 0.0 }
  0x1e   : > { %v315_v51 = vadd.f32 %v314_v41, %v313_v44  ;;  %v228_v3 = vcombine.high %v211_v57, %v211_v57  ;;  %v263_v4 = vsel %vm237_vm1, %v227_v54, 0.0  ;;  %v281_v7 = vmul.f32 %v210_v45, %v210_v45 }
  0x1f   : > { %v250_v34 = vadd.f32 %v249_v25, %v248_v26  ;;  %v296_v8 = vcombine.high %v280_v59, %v280_v59  ;;  %v324_v9 = vsel %vm237_vm1, %v295_v60, 0.0  ;;  %v265_v10 = vsel %vm237_vm1, %v211_v57, 0.0 }
  0x20   : > { %v317_v56 = vadd.f32 %v316_v49, %v315_v51  ;;  %v326_v13 = vsel %vm237_vm1, %v280_v59, 0.0  ;;  %v267_v14 = vsel %vm237_vm1, %v228_v3, 0.0  ;;  %v282_v17 = vmul.f32 %v211_v57, %v211_v57 }
  0x21   : > { %v252_v40 = vadd.f32 %v251_v31, %v250_v34  ;;  %v297_v18 = vcombine.high %v281_v7, %v281_v7  ;;  %v328_v19 = vsel %vm237_vm1, %v296_v8, 0.0  ;;  %v330_v22 = vsel %vm237_vm1, %v281_v7, 0.0 }
  0x22   : > { %v319_v63 = vadd.f32 %v318_v53, %v317_v56  ;;  %v298_v24 = vcombine.high %v282_v17, %v282_v17  ;;  %v334_v27 = vsel %vm237_vm1, %v282_v17, 0.0 }
  0x23   : > { %v254_v46 = vadd.f32 %v253_v38, %v252_v40  ;;  %v332_v25 = vsel %vm237_vm1, %v297_v18, 0.0 }
  0x24   : > { %v321_v5 = vadd.f32 %v320_v61, %v319_v63  ;;  %v336_v29 = vsel %vm237_vm1, %v298_v24, 0.0 }
  0x25   : > { %v256_v52 = vadd.f32 %v255_v43, %v254_v46 }
  0x26   : > { %v323_v11 = vadd.f32 %v322_v1, %v321_v5 }
  0x27   : > { %v258_v58 = vadd.f32 %v257_v50, %v256_v52 }
  0x28   : > { %v325_v15 = vadd.f32 %v324_v9, %v323_v11 }
  0x29   : > { %v260_v0 = vadd.f32 %v259_v55, %v258_v58 }
  0x2a   : > { %v327_v20 = vadd.f32 %v326_v13, %v325_v15 }
  0x2b   : > { %v262_v6 = vadd.f32 %v261_v62, %v260_v0 }
  0x2c   : > { %v329_v23 = vadd.f32 %v328_v19, %v327_v20 }
  0x2d   : > { %v264_v12 = vadd.f32 %v263_v4, %v262_v6 }
  0x2e   : > { %v331_v26 = vadd.f32 %v330_v22, %v329_v23 }
  0x2f   : > { %v266_v16 = vadd.f32 %v265_v10, %v264_v12 }
  0x30   : > { %v333_v28 = vadd.f32 %v332_v25, %v331_v26 }
  0x31   : > { %v268_v21 = vadd.f32 %v267_v14, %v266_v16 }
  0x32   : > { %v335_v30 = vadd.f32 %v334_v27, %v333_v28 }
  0x33   : > { %269 = vadd.xlane.f32.xlu0 %v268_v21 }
  0x34   : > { %v337_v31 = vadd.f32 %v336_v29, %v335_v30 }
  0x37   : > { %338 = vadd.xlane.f32.xlu0 %v337_v31 }
  0xc0   : > { %v270_v33 = vpop.xlane.xlu0 %269 }
  0xc1   : > { %v271_v34 = vadd.f32 %v270_v33, %v212_v32 }
  0xc3   : > { %273 = vst.msk [vmem:[%s560_s20] sm:$0xf] %vm201_vm0, %v271_v34 }
  0xc4   : > { %v339_v36 = vpop.xlane.xlu0 %338 }
  0xc5   : > { %v340_v37 = vadd.f32 %v339_v36, %v274_v35 }
  0xc7   : > { %341 = vst.msk [vmem:[%s194_s23] sm:$0xf] %vm201_vm0, %v340_v37 }
  0xc8 PF: > { %s13_s11 = sadd.s32 1, %s510_s11   ;;  %s628_s9 = smov %s506_s10 }
  0xc9   : > { %p10_p5 = scmp.ge.s32.totalorder %s13_s11, 4   ;;  %s629_s10 = smov %s631_s12 }
  0xcb   :  { %12 = sbr.rel (!%p10_p5) target bundleno = 2 (0x2), region = 70 }

// kernel: _bn_ac_conv3d_impl.3
= control target key start
LH: loop header
LB: loop body
LE: loop exit
PB: predicated region body
PF: predicated region fallthrough
CT: control target
= control target key end

     0   :  { %s1107_s12 = smov 0   ;;  %s1109_s13 = smov 0   ;;  %s1203_s0 = inlined_call_operand.vmem [shape: f32[2,4,2048], index: 0, kind: input, shape index: {}]   ;;  %s1204_s1 = inlined_call_operand.vmem [shape: f32[2,4,1], index: 1, kind: input, shape index: {}]   ;;  %s1205_s2 = inlined_call_operand.vmem [shape: f32[8,4], index: 2, kind: input, shape index: {}]   ;;  %s1206_s3 = inlined_call_operand.vmem [shape: f32[2,8,2048], index: 3, kind: output, shape index: {}]  }
   0x1   :  { %s1111_s14 = smov 0  }
   0x2 LB: > { %s25_s15 = sadd.s32 1, %s1078_s13  ;;  %p998_p0 = scmp.ge.s32.totalorder %s1082_s14, 1  ;;  %s1082_s14 = sphi %s1111_s14, %s13_s14   ;;  %s1078_s13 = sphi %s1109_s13, %s1208_s13   ;;  %s1074_s12 = sphi %s1107_s12, %s1207_s12  }
   0x3   : > { %p27_p1 = scmp.ge.s32.totalorder %s25_s15, 2  ;;  %p158_p2 = scmp.lt.s32.totalorder %s1082_s14, 3 }
   0x5   : > { %s1210_s15 = smov (%p27_p1, %s25_s15), 0  ;;  %p159_p3 = pnand %p998_p0, %p158_p2 }
   0x6   : > { %v218_v0 = vld [vmem:[%s1204_s1] sm:$0xf] (!%p159_p3)  ;;  %v1084_v1 = vmov (!%p159_p3), 0   ;;  %v1003_v2 = vld [vmem:[%s1204_s1 + $0x4] sm:$0xf] (!%p159_p3)  ;;  %v1085_v3 = vmov (!%p159_p3), 0.0   ;;  %v226_v6 = vlaneseq (!%p159_p3) }
   0x7   : > { %162 = sbr.rel (%p159_p3) target bundleno = 377 (0x179), region = 32  ;;  %1059 = vset.pattern.permute.xlu0 (!%p159_p3), %v1084_v1  ;;  %387 = vmatprep.mubr.f32.mxu0 (!%p159_p3), %v1085_v3  ;;  %p191_p4 = scmp.lt.s32.totalorder (!%p159_p3), %s1074_s12, 1  ;;  %v1086_v4 = vmov (!%p159_p3), 839922192   ;;  %vm290_vm0 = vcmask (!%p159_p3), 1043456   ;;  %vm286_vm1 = vcmask (!%p159_p3), 31744  }
   0x8   : > { %221 = vperm.xlu0 (!%p159_p3), %1059, %v218_v0   ;;  %458 = vmatprep.mubr.f32.mxu1 (!%p159_p3), %v1085_v3  ;;  %v224_v5 = vunpack.c.l.s4 (!%p159_p3), %v1086_v4  ;;  %v227_v8 = vshrl.u32 (!%p159_p3), %v226_v6, 7  ;;  %v269_v42 = vld [vmem:[%s1205_s2] sm:$0xff] (!%p159_p3) }
   0xa   : > { %v225_v7 = vunpack.c.0.s8 (!%p159_p3), %v224_v5 }
   0xc   : > { %243 = vperm.xlu0 (!%p159_p3), %1059, %v1003_v2   ;;  %v228_v9 = vsub.s32 (!%p159_p3), %v225_v7, %v227_v8 }
   0xe   : > { %s1212_s12 = smov (!%p191_p4, %s1074_s12), 1 }
   0xf   : > { %s1030_s20 = sshll.u32 %s1212_s12, 6  ;;  %s1031_s26 = sshll.u32 %s1212_s12, 7 }
  0x10   : > { %s198_s23 = scalar_lea.vmem %s1203_s0, %s1030_s20  ;;  %s1176_s29 = scalar_lea.vmem %s1206_s3, %s1031_s26 }
  0x11   : > { %v210_v12 = vld [vmem:[%s198_s23] sm:$0xff]  ;;  %v211_v13 = vld [vmem:[%s198_s23 + $0x8] sm:$0xff]  ;;  %v212_v14 = vld [vmem:[%s198_s23 + $0x10] sm:$0xff] }
  0x12   : > { %v213_v15 = vld [vmem:[%s198_s23 + $0x18] sm:$0xff]  ;;  %v214_v16 = vld [vmem:[%s198_s23 + $0x20] sm:$0xff]  ;;  %v215_v17 = vld [vmem:[%s198_s23 + $0x28] sm:$0xff] }
  0x13   : > { %v216_v30 = vld [vmem:[%s198_s23 + $0x30] sm:$0xff]  ;;  %v217_v31 = vld [vmem:[%s198_s23 + $0x38] sm:$0xff] }
  0x87   : > { %v222_v10 = vpop.permute.xlu0 %221 }
  0x88   : > { %v229_v11 = vrot.slane %v222_v10, %v228_v9 }
  0x8a   : > { %v231_v19 = vmul.f32 %v229_v11, %v210_v12  ;;  %v232_v21 = vmul.f32 %v229_v11, %v211_v13  ;;  %v233_v22 = vmul.f32 %v229_v11, %v212_v14  ;;  %v234_v23 = vmul.f32 %v229_v11, %v213_v15 }
  0x8b   : > { %v244_v18 = vpop.permute.xlu0 %243  ;;  %v235_v24 = vmul.f32 %v229_v11, %v214_v16  ;;  %v236_v25 = vmul.f32 %v229_v11, %v215_v17  ;;  %v237_v38 = vmul.f32 %v229_v11, %v216_v30  ;;  %v238_v39 = vmul.f32 %v229_v11, %v217_v31 }
  0x8c   : > { %v251_v20 = vrot.slane %v244_v18, %v228_v9 }
  0x8e   : > { %v253_v26 = vadd.f32 %v251_v20, %v231_v19  ;;  %v254_v27 = vadd.f32 %v251_v20, %v232_v21  ;;  %v255_v28 = vadd.f32 %v251_v20, %v233_v22  ;;  %v256_v29 = vadd.f32 %v251_v20, %v234_v23 }
  0x8f   : > { %v257_v32 = vadd.f32 %v251_v20, %v235_v24  ;;  %v258_v33 = vadd.f32 %v251_v20, %v236_v25  ;;  %v259_v45 = vadd.f32 %v251_v20, %v237_v38  ;;  %v260_v46 = vadd.f32 %v251_v20, %v238_v39 }
  0x90   : > { %v261_v34 = vmax.f32 %v253_v26, 0.0  ;;  %v262_v35 = vmax.f32 %v254_v27, 0.0  ;;  %v263_v36 = vmax.f32 %v255_v28, 0.0  ;;  %v264_v37 = vmax.f32 %v256_v29, 0.0 }
  0x91   : > { %v265_v43 = vmax.f32 %v257_v32, 0.0  ;;  %v266_v44 = vmax.f32 %v258_v33, 0.0  ;;  %v267_v51 = vmax.f32 %v259_v45, 0.0  ;;  %v268_v52 = vmax.f32 %v260_v46, 0.0 }
  0x92   : > { %v278_v40 = vcombine.high %v261_v34, %v261_v34  ;;  %v279_v41 = vcombine.high %v262_v35, %v262_v35  ;;  %v280_v47 = vcombine.high %v263_v36, %v263_v36  ;;  %v281_v48 = vcombine.high %v264_v37, %v264_v37 }
  0x93   : > { %v282_v49 = vcombine.high %v265_v43, %v265_v43  ;;  %v283_v50 = vcombine.high %v266_v44, %v266_v44  ;;  %v284_v53 = vcombine.high %v267_v51, %v267_v51  ;;  %v285_v54 = vcombine.high %v268_v52, %v268_v52 }
  0x94   : > { %1004 = vmatprep.subr.msk.mxu0 %vm290_vm0, %v278_v40  ;;  %1007 = vmatprep.subr.msk.mxu1 %vm290_vm0, %v279_v41 }
  0x95   : > { %1005 = vmatpush1.msk.msra.mxu0 %vm290_vm0, %v261_v34  ;;  %1008 = vmatpush1.msk.msra.mxu1 %vm290_vm0, %v262_v35 }
  0x96   : > { %1006 = vmatmul.mubr.msk.f32.vlgmr.msra.gmra.mrb[0].mxu0 %vm286_vm1, %v269_v42  ;;  %1009 = vmatmul.mubr.msk.f32.vlgmr.msra.gmra.mrb[0].mxu1 %vm286_vm1, %v269_v42 }
  0x97   : > { %1010 = vmatprep.subr.msk.mxu0 %vm290_vm0, %v280_v47  ;;  %1013 = vmatprep.subr.msk.mxu1 %vm290_vm0, %v281_v48 }
  0x98   : > { %1011 = vmatpush1.msk.msra.mxu0 %vm290_vm0, %v263_v36  ;;  %1014 = vmatpush1.msk.msra.mxu1 %vm290_vm0, %v264_v37 }
  0x99   : > { %1016 = vmatprep.subr.msk.mxu0 %vm290_vm0, %v282_v49  ;;  %1019 = vmatprep.subr.msk.mxu1 %vm290_vm0, %v283_v50 }
  0x9a   : > { %529 = vmatprep.mubr.f32.mxu0 %v1085_v3  ;;  %600 = vmatprep.mubr.f32.mxu1 %v1085_v3 }
  0x9b   : > { %1012 = vmatmul.mubr.msk.f32.vlgmr.msra.gmra.mrb[2].mxu0 %vm286_vm1, %v269_v42  ;;  %1015 = vmatmul.mubr.msk.f32.vlgmr.msra.gmra.mrb[2].mxu1 %vm286_vm1, %v269_v42 }
  0x9c   : > { %1017 = vmatpush1.msk.msra.mxu0 %vm290_vm0, %v265_v43  ;;  %1020 = vmatpush1.msk.msra.mxu1 %vm290_vm0, %v266_v44 }
  0x9d   : > { %1022 = vmatprep.subr.msk.mxu0 %vm290_vm0, %v284_v53  ;;  %1025 = vmatprep.subr.msk.mxu1 %vm290_vm0, %v285_v54 }
  0x9e   : > { %671 = vmatprep.mubr.f32.mxu0 %v1085_v3  ;;  %742 = vmatprep.mubr.f32.mxu1 %v1085_v3 }
  0x9f   : > { %1018 = vmatmul.mubr.msk.f32.vlgmr.msra.gmra.mrb[4].mxu0 %vm286_vm1, %v269_v42  ;;  %1021 = vmatmul.mubr.msk.f32.vlgmr.msra.gmra.mrb[4].mxu1 %vm286_vm1, %v269_v42 }
  0xa0   : > { %1023 = vmatpush1.msk.msra.mxu0 %vm290_vm0, %v267_v51  ;;  %1026 = vmatpush1.msk.msra.mxu1 %vm290_vm0, %v268_v52 }
  0xa1   : > { %813 = vmatprep.mubr.f32.mxu0 %v1085_v3  ;;  %884 = vmatprep.mubr.f32.mxu1 %v1085_v3 }
  0xa3   : > { %1024 = vmatmul.mubr.msk.f32.vlgmr.msra.gmra.mrb[6].mxu0 %vm286_vm1, %v269_v42  ;;  %1027 = vmatmul.mubr.msk.f32.vlgmr.msra.gmra.mrb[6].mxu1 %vm286_vm1, %v269_v42 }
 0x169   : > { %v389_v55 = vpop.f32.mrb[0].mxu0  ;;  %v460_v56 = vpop.f32.mrb[0].mxu1 }
 0x16a   : > { %891 = vst [vmem:[%s1176_s29] sm:$0xff] %v389_v55  ;;  %893 = vst [vmem:[%s1176_s29 + $0x10] sm:$0xff] %v460_v56  ;;  %v391_v57 = vpop.f32.mrb[1].mxu0  ;;  %v462_v58 = vpop.f32.mrb[1].mxu1 }
 0x16b   : > { %892 = vst [vmem:[%s1176_s29 + $0x8] sm:$0xff] %v391_v57  ;;  %894 = vst [vmem:[%s1176_s29 + $0x18] sm:$0xff] %v462_v58 }
 0x16e   : > { %v531_v59 = vpop.f32.mrb[2].mxu0  ;;  %v602_v60 = vpop.f32.mrb[2].mxu1 }
 0x16f   : > { %895 = vst [vmem:[%s1176_s29 + $0x20] sm:$0xff] %v531_v59  ;;  %897 = vst [vmem:[%s1176_s29 + $0x30] sm:$0xff] %v602_v60  ;;  %v533_v61 = vpop.f32.mrb[3].mxu0  ;;  %v604_v62 = vpop.f32.mrb[3].mxu1 }
 0x170   : > { %896 = vst [vmem:[%s1176_s29 + $0x28] sm:$0xff] %v533_v61  ;;  %898 = vst [vmem:[%s1176_s29 + $0x38] sm:$0xff] %v604_v62 }
 0x172   : > { %v673_v63 = vpop.f32.mrb[4].mxu0  ;;  %v744_v0 = vpop.f32.mrb[4].mxu1 }
 0x173   : > { %899 = vst [vmem:[%s1176_s29 + $0x40] sm:$0xff] %v673_v63  ;;  %901 = vst [vmem:[%s1176_s29 + $0x50] sm:$0xff] %v744_v0  ;;  %v675_v1 = vpop.f32.mrb[5].mxu0  ;;  %v746_v2 = vpop.f32.mrb[5].mxu1 }
 0x174   : > { %900 = vst [vmem:[%s1176_s29 + $0x48] sm:$0xff] %v675_v1  ;;  %902 = vst [vmem:[%s1176_s29 + $0x58] sm:$0xff] %v746_v2 }
 0x176   : > { %v815_v3 = vpop.f32.mrb[6].mxu0  ;;  %v886_v4 = vpop.f32.mrb[6].mxu1 }
 0x177   : > { %903 = vst [vmem:[%s1176_s29 + $0x60] sm:$0xff] %v815_v3  ;;  %905 = vst [vmem:[%s1176_s29 + $0x70] sm:$0xff] %v886_v4  ;;  %v817_v5 = vpop.f32.mrb[7].mxu0  ;;  %v888_v6 = vpop.f32.mrb[7].mxu1 }
 0x178   : > { %904 = vst [vmem:[%s1176_s29 + $0x68] sm:$0xff] %v817_v5  ;;  %906 = vst [vmem:[%s1176_s29 + $0x78] sm:$0xff] %v888_v6 }
 0x179 PF: > { %s13_s14 = sadd.s32 1, %s1082_s14   ;;  %s1207_s12 = smov %s1078_s13 }
 0x17a   : > { %p10_p5 = scmp.ge.s32.totalorder %s13_s14, 4   ;;  %s1208_s13 = smov %s1210_s15 }
 0x17c   :  { %12 = sbr.rel (!%p10_p5) target bundleno = 2 (0x2), region = 63 }

</bundles_post_ra>
